<compile_context>
chip_gen: v6e
topology: v6e:2x2x1
jax: 0.10.0
libtpu: 0.0.40
codegen_flags: <defaults>
</compile_context>

<pallas_src>
import functools

import jax
import jax.numpy as jnp
from jax.experimental import pallas as pl
from jax.experimental.pallas import tpu as pltpu

BN_EPS = 1e-5
HIDDEN_DIMS = (256, 128, 64)
LANE = 128


def _mlp_kernel(x_ref,
                w0_ref, b0_ref,
                w1_ref, b1_ref,
                w2_ref, b2_ref,
                w3_ref, b3_ref,
                out_ref):
    """Fused (Linear -> ReLU) x3 + final Linear on one batch tile.

    BatchNorm (eval) and the identity dropout were folded into the weights in
    the wrapper, so the MXU is the only unit doing real work here.
    """

    def layer(h, w_ref, b_ref):
        z = jnp.dot(h, w_ref[...], preferred_element_type=jnp.float32)
        z = z + b_ref[...]
        return jnp.maximum(z, 0.0).astype(jnp.bfloat16)

    h = x_ref[...].astype(jnp.bfloat16)
    h = layer(h, w0_ref, b0_ref)
    h = layer(h, w1_ref, b1_ref)
    h = layer(h, w2_ref, b2_ref)

    logits = jnp.dot(h, w3_ref[...], preferred_element_type=jnp.float32)
    out_ref[...] = (logits + b3_ref[...]).astype(out_ref.dtype)


def _round_up(x, m):
    return (x + m - 1) // m * m


def _fold_bn_into_linears(params):
    """Fold eval-mode BatchNorm1d (after ReLU of layer i) into Linear i+1.

    BN(h) = h * scale + shift with scale = gamma * rsqrt(var + eps),
    shift = beta - mean * scale, so  Linear(BN(h)) = h @ (scale[:,None]*W) +
    (shift @ W + b).  Exact in f32.
    """
    ws, bs = [params["w0"]], [params["b0"]]
    for i in range(len(HIDDEN_DIMS)):
        scale = params[f"gamma{i}"] * jax.lax.rsqrt(params[f"var{i}"] + BN_EPS)  # (1, h)
        shift = params[f"beta{i}"] - params[f"mean{i}"] * scale                  # (1, h)
        w_next = params[f"w{i + 1}"]                                             # (h, n)
        b_next = params[f"b{i + 1}"]                                             # (1, n)
        ws.append(scale.reshape(-1, 1) * w_next)
        bs.append(b_next + shift @ w_next)
    return ws, bs


@functools.partial(jax.jit, static_argnames=("output_dim",))
def missing_value_classifier_forward(x, params, output_dim=15):
    """x: [B, 2*input_dim] float32 (features concatenated with missing indicators)."""
    batch, in_dim = x.shape

    # --- host-side (traced, tiny) parameter preparation --------------------
    ws, bs = _fold_bn_into_linears(params)

    # Pad final layer to a lane-dense (multiple of 128) output width so the
    # store path uses full vst instead of masked partial stores.
    out_pad = _round_up(output_dim, LANE)
    w3 = jnp.zeros((ws[3].shape[0], out_pad), ws[3].dtype).at[:, :output_dim].set(ws[3])
    b3 = jnp.zeros((1, out_pad), bs[3].dtype).at[:, :output_dim].set(bs[3])
    ws[3], bs[3] = w3, b3

    # bf16 weights -> native MXU rate with f32 accumulation; biases stay f32.
    ws = [w.astype(jnp.bfloat16) for w in ws]
    bs = [b.astype(jnp.float32) for b in bs]

    # --- batch tiling -------------------------------------------------------
    # Big sublane-dense batch tiles amortize per-grid-step overhead and let
    # Pallas double-buffer the x/out DMAs behind the matmuls.  Weights
    # (<0.2 MiB) are VMEM-resident via constant index_maps, so per-step VMEM
    # stays a few MiB even on v7x's 64 MiB.
    tb = min(1024, _round_up(batch, 8))
    b_pad = _round_up(batch, tb)
    if b_pad != batch:
        x = jnp.pad(x, ((0, b_pad - batch), (0, 0)))
    grid = (b_pad // tb,)

    weight_args = []
    weight_specs = []
    for w, b in zip(ws, bs):
        weight_args += [w, b]
        weight_specs += [
            pl.BlockSpec(w.shape, lambda i: (0, 0)),   # resident across the grid
            pl.BlockSpec(b.shape, lambda i: (0, 0)),
        ]

    dims = [in_dim, *HIDDEN_DIMS, out_pad]
    flops = 2 * b_pad * sum(a * b for a, b in zip(dims[:-1], dims[1:]))
    bytes_accessed = (b_pad * in_dim * 4 + b_pad * out_pad * 4
                      + sum(w.size * 2 for w in ws) + sum(b.size * 4 for b in bs))

    out = pl.pallas_call(
        _mlp_kernel,
        out_shape=jax.ShapeDtypeStruct((b_pad, out_pad), jnp.float32),
        grid=grid,
        in_specs=[pl.BlockSpec((tb, in_dim), lambda i: (i, 0))] + weight_specs,
        out_specs=pl.BlockSpec((tb, out_pad), lambda i: (i, 0)),
        compiler_params=pltpu.CompilerParams(
            dimension_semantics=("parallel",)),
        cost_estimate=pl.CostEstimate(
            flops=flops, transcendentals=0, bytes_accessed=bytes_accessed),
    )(x, *weight_args)

    return out[:batch, :output_dim]


def init_params(key, input_dim, output_dim=15, hidden_dims=HIDDEN_DIMS):
    """Deterministic init matching PyTorch nn.Linear / nn.BatchNorm1d defaults."""
    augmented_input_dim = input_dim * 2
    dims = [augmented_input_dim, *hidden_dims, output_dim]

    params = {}
    keys = jax.random.split(key, len(dims) - 1)
    for i, (fan_in, fan_out) in enumerate(zip(dims[:-1], dims[1:])):
        kw, kb = jax.random.split(keys[i])
        bound = 1.0 / (fan_in ** 0.5)
        # stored already transposed: [in, out]
        params[f"w{i}"] = jax.random.uniform(
            kw, (fan_in, fan_out), jnp.float32, -bound, bound)
        params[f"b{i}"] = jax.random.uniform(
            kb, (1, fan_out), jnp.float32, -bound, bound)

    # BatchNorm1d defaults: gamma=1, beta=0, running_mean=0, running_var=1
    for i, h in enumerate(hidden_dims):
        params[f"gamma{i}"] = jnp.ones((1, h), jnp.float32)
        params[f"beta{i}"] = jnp.zeros((1, h), jnp.float32)
        params[f"mean{i}"] = jnp.zeros((1, h), jnp.float32)
        params[f"var{i}"] = jnp.ones((1, h), jnp.float32)
    return params


def _reference_forward(x, params):
    """Pure-JAX f32 reference with explicit (unfused) eval-mode BatchNorm."""
    h = x
    for i in range(3):
        z = h @ params[f"w{i}"] + params[f"b{i}"]
        z = jnp.maximum(z, 0.0)
        inv_std = jax.lax.rsqrt(params[f"var{i}"] + BN_EPS)
        h = (z - params[f"mean{i}"]) * (params[f"gamma{i}"] * inv_std) + params[f"beta{i}"]
    return h @ params["w3"] + params["b3"]


if __name__ == "__main__":
    key = jax.random.PRNGKey(0)
    k_param, k_x = jax.random.split(key)

    input_dim = 16          # original feature count (augmented -> 32)
    batch = 8
    output_dim = 15

    params = init_params(k_param, input_dim, output_dim=output_dim)

    # Augmented input: [features, missing-value indicators] -> [B, 2*input_dim]
    x = jax.random.normal(k_x, (batch, 2 * input_dim), jnp.float32)

    out = missing_value_classifier_forward(x, params, output_dim=output_dim)
    out = jax.block_until_ready(out)

    ref = _reference_forward(x, params)
    assert out.shape == (batch, output_dim)
    # bf16 matmul operands with f32 accumulation -> loosened tolerance.
    assert jnp.allclose(out, ref, atol=3e-2, rtol=3e-2), \
        float(jnp.abs(out - ref).max())

    print("KERNEL_OK")
</pallas_src>

<mosaic_0001>
module attributes {stable_mosaic.version = 11 : i64} {
  func.func @_mlp_kernel(%arg0: i32, %arg1: memref<8x32xf32, #tpu.memory_space<vmem>>, %arg2: memref<32x256xbf16, #tpu.memory_space<vmem>>, %arg3: memref<1x256xf32, #tpu.memory_space<vmem>>, %arg4: memref<256x128xbf16, #tpu.memory_space<vmem>>, %arg5: memref<1x128xf32, #tpu.memory_space<vmem>>, %arg6: memref<128x64xbf16, #tpu.memory_space<vmem>>, %arg7: memref<1x64xf32, #tpu.memory_space<vmem>>, %arg8: memref<64x128xbf16, #tpu.memory_space<vmem>>, %arg9: memref<1x128xf32, #tpu.memory_space<vmem>>, %arg10: memref<8x128xf32, #tpu.memory_space<vmem>>) attributes {dimension_semantics = [#tpu.dimension_semantics<parallel>], iteration_bounds = array<i64: 1>, scalar_prefetch = 0 : i64, scratch_operands = 0 : i64, tpu.core_type = #tpu.core_type<tc>, window_params = [{transform_indices = @transform_0, window_bounds = array<i64: 8, 32>}, {pipeline_mode = #tpu.pipeline_mode<synchronous>, transform_indices = @transform_1, window_bounds = array<i64: 32, 256>}, {pipeline_mode = #tpu.pipeline_mode<synchronous>, transform_indices = @transform_2, window_bounds = array<i64: 1, 256>}, {pipeline_mode = #tpu.pipeline_mode<synchronous>, transform_indices = @transform_3, window_bounds = array<i64: 256, 128>}, {pipeline_mode = #tpu.pipeline_mode<synchronous>, transform_indices = @transform_4, window_bounds = array<i64: 1, 128>}, {pipeline_mode = #tpu.pipeline_mode<synchronous>, transform_indices = @transform_5, window_bounds = array<i64: 128, 64>}, {pipeline_mode = #tpu.pipeline_mode<synchronous>, transform_indices = @transform_6, window_bounds = array<i64: 1, 64>}, {pipeline_mode = #tpu.pipeline_mode<synchronous>, transform_indices = @transform_7, window_bounds = array<i64: 64, 128>}, {pipeline_mode = #tpu.pipeline_mode<synchronous>, transform_indices = @transform_8, window_bounds = array<i64: 1, 128>}, {transform_indices = @transform_9, window_bounds = array<i64: 8, 128>}]} {
    %c0 = arith.constant 0 : index
    %c0_0 = arith.constant 0 : index
    %0 = vector.load %arg1[%c0, %c0_0] : memref<8x32xf32, #tpu.memory_space<vmem>>, vector<8x32xf32>
    %1 = arith.truncf %0 : vector<8x32xf32> to vector<8x32xbf16>
    %c0_1 = arith.constant 0 : index
    %c0_2 = arith.constant 0 : index
    %2 = vector.load %arg2[%c0_1, %c0_2] : memref<32x256xbf16, #tpu.memory_space<vmem>>, vector<32x256xbf16>
    %cst = arith.constant dense<0.000000e+00> : vector<8x256xf32>
    %3 = tpu.matmul %1, %2, %cst {dimension_numbers = #tpu.dot_dimension_numbers<[1], [0], [0], [1], [0, 0, 1, 1], [], []>} : vector<8x32xbf16>, vector<32x256xbf16>, vector<8x256xf32> -> vector<8x256xf32>
    %c0_3 = arith.constant 0 : index
    %c0_4 = arith.constant 0 : index
    %4 = vector.load %arg3[%c0_3, %c0_4] : memref<1x256xf32, #tpu.memory_space<vmem>>, vector<1x256xf32>
    %5 = vector.broadcast %4 : vector<1x256xf32> to vector<8x256xf32>
    %6 = arith.addf %3, %5 : vector<8x256xf32>
    %cst_5 = arith.constant 0.000000e+00 : f32
    %7 = vector.broadcast %cst_5 : f32 to vector<8x256xf32>
    %8 = arith.maximumf %6, %7 : vector<8x256xf32>
    %9 = arith.truncf %8 : vector<8x256xf32> to vector<8x256xbf16>
    %c0_6 = arith.constant 0 : index
    %c0_7 = arith.constant 0 : index
    %10 = vector.load %arg4[%c0_6, %c0_7] : memref<256x128xbf16, #tpu.memory_space<vmem>>, vector<256x128xbf16>
    %cst_8 = arith.constant dense<0.000000e+00> : vector<8x128xf32>
    %11 = tpu.matmul %9, %10, %cst_8 {dimension_numbers = #tpu.dot_dimension_numbers<[1], [0], [0], [1], [0, 0, 1, 1], [], []>} : vector<8x256xbf16>, vector<256x128xbf16>, vector<8x128xf32> -> vector<8x128xf32>
    %c0_9 = arith.constant 0 : index
    %c0_10 = arith.constant 0 : index
    %12 = vector.load %arg5[%c0_9, %c0_10] : memref<1x128xf32, #tpu.memory_space<vmem>>, vector<1x128xf32>
    %13 = vector.broadcast %12 : vector<1x128xf32> to vector<8x128xf32>
    %14 = arith.addf %11, %13 : vector<8x128xf32>
    %cst_11 = arith.constant 0.000000e+00 : f32
    %15 = vector.broadcast %cst_11 : f32 to vector<8x128xf32>
    %16 = arith.maximumf %14, %15 : vector<8x128xf32>
    %17 = arith.truncf %16 : vector<8x128xf32> to vector<8x128xbf16>
    %c0_12 = arith.constant 0 : index
    %c0_13 = arith.constant 0 : index
    %18 = vector.load %arg6[%c0_12, %c0_13] : memref<128x64xbf16, #tpu.memory_space<vmem>>, vector<128x64xbf16>
    %cst_14 = arith.constant dense<0.000000e+00> : vector<8x64xf32>
    %19 = tpu.matmul %17, %18, %cst_14 {dimension_numbers = #tpu.dot_dimension_numbers<[1], [0], [0], [1], [0, 0, 1, 1], [], []>} : vector<8x128xbf16>, vector<128x64xbf16>, vector<8x64xf32> -> vector<8x64xf32>
    %c0_15 = arith.constant 0 : index
    %c0_16 = arith.constant 0 : index
    %20 = vector.load %arg7[%c0_15, %c0_16] : memref<1x64xf32, #tpu.memory_space<vmem>>, vector<1x64xf32>
    %21 = vector.broadcast %20 : vector<1x64xf32> to vector<8x64xf32>
    %22 = arith.addf %19, %21 : vector<8x64xf32>
    %cst_17 = arith.constant 0.000000e+00 : f32
    %23 = vector.broadcast %cst_17 : f32 to vector<8x64xf32>
    %24 = arith.maximumf %22, %23 : vector<8x64xf32>
    %25 = arith.truncf %24 : vector<8x64xf32> to vector<8x64xbf16>
    %c0_18 = arith.constant 0 : index
    %c0_19 = arith.constant 0 : index
    %26 = vector.load %arg8[%c0_18, %c0_19] : memref<64x128xbf16, #tpu.memory_space<vmem>>, vector<64x128xbf16>
    %cst_20 = arith.constant dense<0.000000e+00> : vector<8x128xf32>
    %27 = tpu.matmul %25, %26, %cst_20 {dimension_numbers = #tpu.dot_dimension_numbers<[1], [0], [0], [1], [0, 0, 1, 1], [], []>} : vector<8x64xbf16>, vector<64x128xbf16>, vector<8x128xf32> -> vector<8x128xf32>
    %c0_21 = arith.constant 0 : index
    %c0_22 = arith.constant 0 : index
    %28 = vector.load %arg9[%c0_21, %c0_22] : memref<1x128xf32, #tpu.memory_space<vmem>>, vector<1x128xf32>
    %29 = vector.broadcast %28 : vector<1x128xf32> to vector<8x128xf32>
    %30 = arith.addf %27, %29 : vector<8x128xf32>
    %c0_23 = arith.constant 0 : index
    %c0_24 = arith.constant 0 : index
    %31 = vector.load %arg10[%c0_23, %c0_24] : memref<8x128xf32, #tpu.memory_space<vmem>>, vector<8x128xf32>
    tpu.vector_store %arg10[%c0_23, %c0_24], %30 {strides = array<i32>} : memref<8x128xf32, #tpu.memory_space<vmem>>, vector<8x128xf32>,
    return
  }
  func.func @transform_0(%arg0: i32) -> (i32, i32) {
    %c0_i32 = arith.constant 0 : i32
    %c0_i32_0 = arith.constant 0 : i32
    return %arg0, %c0_i32 : i32, i32
  }
  func.func @transform_1(%arg0: i32) -> (i32, i32) {
    %c0_i32 = arith.constant 0 : i32
    %c0_i32_0 = arith.constant 0 : i32
    %c0_i32_1 = arith.constant 0 : i32
    return %c0_i32, %c0_i32_0 : i32, i32
  }
  func.func @transform_2(%arg0: i32) -> (i32, i32) {
    %c0_i32 = arith.constant 0 : i32
    %c0_i32_0 = arith.constant 0 : i32
    %c0_i32_1 = arith.constant 0 : i32
    return %c0_i32, %c0_i32_0 : i32, i32
  }
  func.func @transform_3(%arg0: i32) -> (i32, i32) {
    %c0_i32 = arith.constant 0 : i32
    %c0_i32_0 = arith.constant 0 : i32
    %c0_i32_1 = arith.constant 0 : i32
    return %c0_i32, %c0_i32_0 : i32, i32
  }
  func.func @transform_4(%arg0: i32) -> (i32, i32) {
    %c0_i32 = arith.constant 0 : i32
    %c0_i32_0 = arith.constant 0 : i32
    %c0_i32_1 = arith.constant 0 : i32
    return %c0_i32, %c0_i32_0 : i32, i32
  }
  func.func @transform_5(%arg0: i32) -> (i32, i32) {
    %c0_i32 = arith.constant 0 : i32
    %c0_i32_0 = arith.constant 0 : i32
    %c0_i32_1 = arith.constant 0 : i32
    return %c0_i32, %c0_i32_0 : i32, i32
  }
  func.func @transform_6(%arg0: i32) -> (i32, i32) {
    %c0_i32 = arith.constant 0 : i32
    %c0_i32_0 = arith.constant 0 : i32
    %c0_i32_1 = arith.constant 0 : i32
    return %c0_i32, %c0_i32_0 : i32, i32
  }
  func.func @transform_7(%arg0: i32) -> (i32, i32) {
    %c0_i32 = arith.constant 0 : i32
    %c0_i32_0 = arith.constant 0 : i32
    %c0_i32_1 = arith.constant 0 : i32
    return %c0_i32, %c0_i32_0 : i32, i32
  }
  func.func @transform_8(%arg0: i32) -> (i32, i32) {
    %c0_i32 = arith.constant 0 : i32
    %c0_i32_0 = arith.constant 0 : i32
    %c0_i32_1 = arith.constant 0 : i32
    return %c0_i32, %c0_i32_0 : i32, i32
  }
  func.func @transform_9(%arg0: i32) -> (i32, i32) {
    %c0_i32 = arith.constant 0 : i32
    %c0_i32_0 = arith.constant 0 : i32
    return %arg0, %c0_i32 : i32, i32
  }
}

</mosaic_0001>

<bundles_post_ra>
// kernel: missing_value_classifier_forward.1
= control target key start
LH: loop header
LB: loop body
LE: loop exit
PB: predicated region body
PF: predicated region fallthrough
CT: control target
= control target key end

     0   :  { %v674_v2 = vmov 0   ;;  %vm72_vm0 = vcmask 261120   ;;  %s856_s0 = inlined_call_operand.vmem [shape: f32[8,32], index: 0, kind: input, shape index: {}]   ;;  %s857_s1 = inlined_call_operand.vmem [shape: bf16[32,256], index: 1, kind: input, shape index: {}]   ;;  %s858_s2 = inlined_call_operand.vmem [shape: f32[1,256], index: 2, kind: input, shape index: {}]   ;;  %s859_s3 = inlined_call_operand.vmem [shape: bf16[256,128], index: 3, kind: input, shape index: {}]   ;;  %s860_s4 = inlined_call_operand.vmem [shape: f32[1,128], index: 4, kind: input, shape index: {}]   ;;  %s861_s5 = inlined_call_operand.vmem [shape: bf16[128,64], index: 5, kind: input, shape index: {}]   ;;  %s862_s6 = inlined_call_operand.vmem [shape: f32[1,64], index: 6, kind: input, shape index: {}]   ;;  %s863_s7 = inlined_call_operand.vmem [shape: bf16[64,128], index: 7, kind: input, shape index: {}]   ;;  %s864_s8 = inlined_call_operand.vmem [shape: f32[1,128], index: 8, kind: input, shape index: {}]   ;;  %s865_s9 = inlined_call_operand.hbm [shape: f32[8,128], index: 9, kind: output, shape index: {}]  }
   0x1   :  { %v618_v0 = vld [vmem:[%s857_s1 + $0x14] ss:$8 sps:$4 sm:$0xff]   ;;  %v620_v1 = vld [vmem:[%s857_s1 + $0x10] ss:$8 sps:$4 sm:$0xff]   ;;  %108 = vmatprep.mubr.bf16.mxu0 %v674_v2  ;;  %v621_v3 = vld [vmem:[%s857_s1 + $0x4] ss:$8 sps:$4 sm:$0xff]  }
   0x2   :  { %88 = vmatprep.subr.bf16.mxu0 %v618_v0  ;;  %v623_v4 = vld [vmem:[%s857_s1] ss:$8 sps:$4 sm:$0xff]   ;;  %v624_v6 = vld [vmem:[%s859_s3 + $0x78] sm:$0xff]   ;;  %v626_v8 = vld [vmem:[%s859_s3 + $0x70] sm:$0xff]  }
   0x3   :  { %v34_v5 = vld [vmem:[%s856_s0] sm:$0xff]  ;;  %89 = vmatpush1.bf16.msra.mxu0 %v620_v1  ;;  %v625_v7 = vld [vmem:[%s859_s3 + $0x38] sm:$0xff]   ;;  %546 = vmatprep.subr.bf16.mxu1 %v624_v6  ;;  %v627_v10 = vld [vmem:[%s859_s3 + $0x30] sm:$0xff]  }
   0x4   :  { %90 = vmatprep.subr.bf16.mxu0 %v621_v3  ;;  %v35_v9 = vpack.c.bf16 %v34_v5, %v34_v5  ;;  %547 = vmatpush3.bf16.msra.mxu1 %v625_v7  ;;  %v628_v11 = vld [vmem:[%s859_s3 + $0x68] sm:$0xff]   ;;  %v630_v13 = vld [vmem:[%s859_s3 + $0x60] sm:$0xff]   ;;  %v632_v15 = vld [vmem:[%s859_s3 + $0x58] sm:$0xff]  }
   0x5   :  { %548 = vmatprep.subr.bf16.mxu1 %v626_v8  ;;  %v629_v12 = vld [vmem:[%s859_s3 + $0x28] sm:$0xff]   ;;  %v631_v14 = vld [vmem:[%s859_s3 + $0x20] sm:$0xff]   ;;  %v633_v16 = vld [vmem:[%s859_s3 + $0x18] sm:$0xff]  }
   0x6   :  { %v634_v17 = vld [vmem:[%s859_s3 + $0x50] sm:$0xff]  }
   0x7   :  { %91 = vmatpush1.bf16.msra.mxu0 %v623_v4  ;;  %v635_v18 = vld [vmem:[%s859_s3 + $0x10] sm:$0xff]  }
   0x8   :  { %549 = vmatpush3.bf16.msra.mxu1 %v627_v10 }
   0x9   :  { %550 = vmatprep.subr.bf16.mxu1 %v628_v11 }
   0xa   :  { %513 = vmatmul.mubr.msk.bf16.vlgmr.msra.gmra.mxu0 %vm72_vm0, %v35_v9 }
   0xc   :  { %551 = vmatpush3.bf16.msra.mxu1 %v629_v12 }
   0xd   :  { %552 = vmatprep.subr.bf16.mxu1 %v630_v13 }
  0x10   :  { %553 = vmatpush3.bf16.msra.mxu1 %v631_v14 }
  0x11   :  { %554 = vmatprep.subr.bf16.mxu1 %v632_v15 }
  0x14   :  { %555 = vmatpush3.bf16.msra.mxu1 %v633_v16 }
  0x15   :  { %556 = vmatprep.subr.bf16.mxu1 %v634_v17 }
  0x18   :  { %557 = vmatpush3.bf16.msra.mxu1 %v635_v18 }
  0x19   :  { %14 = vsyncpa [#allocation3], 0  ;;  %v636_v19 = vld [vmem:[%s859_s3 + $0x48] sm:$0xff]   ;;  %v638_v21 = vld [vmem:[%s859_s3 + $0x40] sm:$0xff]   ;;  %v675_v24 = vmov 0.0   ;;  %v42_v29 = vlaneseq  ;;  %vm676_vm1 = vmmov 0  }
  0x1a   :  { %v637_v20 = vld [vmem:[%s859_s3 + $0x8] sm:$0xff]   ;;  %558 = vmatprep.subr.bf16.mxu1 %v636_v19  ;;  %v639_v22 = vld [vmem:[%s859_s3] sm:$0xff]   ;;  %v640_v23 = vld [vmem:[%s861_s5 + $0x38] sm:$0xff]   ;;  %582 = vmatprep.subr.bf16.mxu0 %v675_v24  ;;  %vm450_vm2 = vcmask 523264   ;;  %s677_s30 = smov [#allocation2]  }
  0x1b   :  { %583 = vmatpush3.bf16.msra.mxu0 %v640_v23  ;;  %v641_v25 = vld [vmem:[%s861_s5 + $0x30] sm:$0xff]   ;;  %v642_v26 = vld [vmem:[%s861_s5 + $0x28] sm:$0xff]   ;;  %v643_v27 = vld [vmem:[%s861_s5 + $0x20] sm:$0xff]   ;;  %v43_v30 = vshrl.u32 %v42_v29, 7  ;;  %598 = vmatprep.mubr.msk.bf16.mxu0 %vm676_vm1, %v675_v24 }
  0x1c   :  { %559 = vmatpush3.bf16.msra.mxu1 %v637_v20  ;;  %584 = vmatprep.subr.bf16.mxu0 %v675_v24  ;;  %v644_v28 = vld [vmem:[%s861_s5 + $0x18] sm:$0xff]   ;;  %v40_v32 = vld [vmem:[%s858_s2] sm:$0x3]  ;;  %v645_v46 = vld [vmem:[%s861_s5 + $0x10] sm:$0xff]  }
  0x1d   :  { %560 = vmatprep.subr.bf16.mxu1 %v638_v21  ;;  %v44_v31 = vsub.s32 0, %v43_v30  ;;  %v48_v33 = vsub.s32 1, %v43_v30  ;;  %v646_v47 = vld [vmem:[%s861_s5 + $0x8] sm:$0xff]   ;;  %v647_v48 = vld [vmem:[%s861_s5] sm:$0xff]   ;;  %v648_v49 = vld [vmem:[%s863_s7 + $0x18] sm:$0xff]  }
  0x1e   :  { %v649_v50 = vld [vmem:[%s863_s7 + $0x10] sm:$0xff]   ;;  %v514_v52 = vld [vmem:[%s860_s4] ss:$0 sm:$0xff]  ;;  %v650_v60 = vld [vmem:[%s863_s7 + $0x8] sm:$0xff]  }
  0x1f   :  { %585 = vmatpush3.bf16.msra.mxu0 %v641_v25  ;;  %v45_v34 = vrot.slane %v40_v32, %v44_v31  ;;  %v49_v35 = vrot.slane %v40_v32, %v48_v33  ;;  %v651_v61 = vld [vmem:[%s863_s7] sm:$0xff]   ;;  %s501_s7 = sshll.u32 %s677_s30, 4  ;;  %s502_s7 = int_to_ptr.vmem [resolvable:$true] %s501_s7 }
  0x20   :  { %561 = vmatpush3.bf16.msra.mxu1 %v639_v22  ;;  %586 = vmatprep.subr.bf16.mxu0 %v675_v24  ;;  %v531_v62 = vld [vmem:[%s862_s6] ss:$0 sm:$0xff]  ;;  %s652_s6 = scalar_lea.vmem %s502_s7, 128  ;;  %p657_p1 = scmp.lt.s32.totalorder %s502_s7, %s502_s7 }
  0x21   :  { %602 = vmatprep.subr.bf16.mxu1 %v675_v24  ;;  %v540_v6 = vld [vmem:[%s864_s8] ss:$0 sm:$0xff]  ;;  %p653_p0 = scmp.ne.s32.totalorder %s502_s7, %s652_s6  ;;  %p658_p2 = scmp.lt.s32.totalorder %s652_s6, %s652_s6 }
  0x23   :  { %587 = vmatpush3.bf16.msra.mxu0 %v642_v26  ;;  %p659_p3 = por %p658_p2, %p657_p1 }
  0x24   :  { %588 = vmatprep.subr.bf16.mxu0 %v675_v24 }
  0x25   :  { %p660_p4 = pnand %p659_p3, %p653_p0 }
  0x27   :  { %589 = vmatpush3.bf16.msra.mxu0 %v643_v27 }
  0x28   :  { %590 = vmatprep.subr.bf16.mxu0 %v675_v24 }
  0x2b   :  { %591 = vmatpush3.bf16.msra.mxu0 %v644_v28 }
  0x2c   :  { %592 = vmatprep.subr.bf16.mxu0 %v675_v24 }
  0x2f   :  { %593 = vmatpush3.bf16.msra.mxu0 %v645_v46 }
  0x30   :  { %594 = vmatprep.subr.bf16.mxu0 %v675_v24 }
  0x33   :  { %595 = vmatpush3.bf16.msra.mxu0 %v646_v47 }
  0x34   :  { %596 = vmatprep.subr.bf16.mxu0 %v675_v24 }
  0x37   :  { %597 = vmatpush3.bf16.msra.mxu0 %v647_v48 }
  0xca   :  { %v110_v36 = vpop.f32.mrf.mxu0 }
  0xcb   :  { %v111_v37 = vadd.f32 %v110_v36, %v45_v34 }
  0xcc   :  { %v112_v38 = vpop.f32.mrf.mxu0 }
  0xcd   :  { %v113_v39 = vadd.f32 %v112_v38, %v49_v35  ;;  %v117_v40 = vmax.f32 %v111_v37, 0.0 }
  0xce   :  { %v114_v41 = vpop.f32.mrf.mxu0 }
  0xcf   :  { %v118_v42 = vmax.f32 %v113_v39, 0.0  ;;  %v119_v45 = vpack.c.bf16 %v117_v40, %v117_v40 }
  0xd0   :  { %v115_v43 = vpop.f32.mrf.mxu0 }
  0xd1   :  { %v120_v44 = vpack.c.bf16 %v118_v42, %v118_v42 }
  0xd3   :  { %288 = vmatprep.mubr.bf16.mxu1 %v120_v44 }
  0xd4   :  { %289 = vmatmul.mubr.bf16.vlgmr.msra.gmra.mxu1 %v119_v45 }
  0xd5   :  { %610 = vmatprep.mubr.msk.bf16.mxu1 %vm676_vm1, %v675_v24  ;;  %603 = vmatpush3.bf16.msra.mxu1 %v648_v49 }
  0xd6   :  { %604 = vmatprep.subr.bf16.mxu1 %v675_v24 }
  0xd9   :  { %605 = vmatpush3.bf16.msra.mxu1 %v649_v50 }
  0xda   :  { %606 = vmatprep.subr.bf16.mxu1 %v675_v24 }
  0xdd   :  { %607 = vmatpush3.bf16.msra.mxu1 %v650_v60 }
  0xde   :  { %608 = vmatprep.subr.bf16.mxu1 %v675_v24 }
  0xe1   :  { %609 = vmatpush3.bf16.msra.mxu1 %v651_v61 }
 0x194   :  { %v562_v51 = vpop.f32.mrf.mxu1 }
 0x196   :  { %v563_v53 = vpop.f32.mrf.mxu1 }
 0x197   :  { %v564_v54 = vadd.f32 %v563_v53, %v562_v51 }
 0x198   :  { %v565_v55 = vpop.f32.mrf.mxu1 }
 0x199   :  { %v291_v56 = vadd.f32 %v564_v54, %v514_v52 }
 0x19a   :  { %v566_v57 = vpop.f32.mrf.mxu1 }
 0x19b   :  { %v296_v58 = vmax.f32 %v291_v56, 0.0 }
 0x19d   :  { %v297_v59 = vpack.c.bf16 %v296_v58, %v296_v58 }
 0x19f   :  { %599 = vmatmul.mubr.bf16.vlgmr.msra.gmra.mxu0 %v297_v59 }
 0x25f   :  { %v403_v63 = vpop.f32.mrf.mxu0 }
 0x260   :  { %v404_v0 = vadd.f32 %v531_v62, %v403_v63 }
 0x261   :  { %v600_v1 = vpop.f32.mrf.mxu0 }
 0x262   :  { %v409_v2 = vmax.f32 %v404_v0, 0.0 }
 0x263   :  { %v406_v3 = vpop.f32.mrf.mxu0 }
 0x264   :  { %v410_v4 = vpack.c.bf16 %v409_v2, %v409_v2 }
 0x265   :  { %v601_v5 = vpop.f32.mrf.mxu0 }
 0x266   :  { %611 = vmatmul.mubr.msk.bf16.vlgmr.msra.gmra.mxu1 %vm450_vm2, %v410_v4 }
 0x326   :  { %v488_v7 = vpop.f32.mrf.mxu1 }
 0x327   :  { %v489_v8 = vadd.f32 %v540_v6, %v488_v7 }
 0x328   :  { %v612_v9 = vpop.f32.mrf.mxu1 }
 0x329   :  { %494 = vst [vmem:[#allocation2] sm:$0xff] %v489_v8 }
 0x32a   :  { %v491_v10 = vpop.f32.mrf.mxu1 }
 0x32b   :  { %663 = shalt.err (!%p660_p4)
}
 0x32c   :  { %504 = dma.vmem_to_hbm [thread:$0]  %s502_s7, 128, %s865_s9, [#allocation3]   ;;  %v613_v11 = vpop.f32.mrf.mxu1 }
 0x32d   :  { %672 = dma.done.wait [#allocation3], 128  }
 0x32e   :  { %673 = vsyncadd [#allocation3], 4294967168 }
 0x32f   :  { %508 = vsyncpa [#allocation3], 1 }

</bundles_post_ra>
